<compile_context>
chip_gen: v5e
topology: v5e:2x2
jax: 0.10.0
libtpu: 0.0.40
codegen_flags: <defaults>
</compile_context>

<pallas_src>
import math
import functools

import jax
import jax.numpy as jnp
from jax.experimental import pallas as pl
from jax.experimental.pallas import tpu as pltpu

_PHI = jax.lax.Precision.HIGHEST  # for the pure-JAX reference only
_VMEM_LIMIT = 48 * 1024 * 1024    # generous scoped-VMEM cap, valid on v5e/v6e/v7x


# ------------------------------ in-kernel helpers --------------------------- #
def _layernorm(z, g, b, eps):
    mean = jnp.mean(z, axis=-1, keepdims=True)
    zc = z - mean
    var = jnp.mean(zc * zc, axis=-1, keepdims=True)
    return zc * jax.lax.rsqrt(var + eps) * g + b


# --------------------------------- kernels ---------------------------------- #
def _attn_block_kernel(*refs, nhead, scale, eps, self_attn, has_xpos, has_kvpos,
                       has_bias):
    """Fused: QKV projection -> per-head softmax attention -> out-proj ->
    residual add -> LayerNorm, for one batch element."""
    it = iter(refs)
    x_ref = next(it)
    xpos_ref = next(it) if has_xpos else None
    if self_attn:
        kv_ref, kvpos_ref = x_ref, xpos_ref
    else:
        kv_ref = next(it)
        kvpos_ref = next(it) if has_kvpos else None
    wq_ref = next(it); bq_ref = next(it)
    wk_ref = next(it); bk_ref = next(it)
    wv_ref = next(it); bv_ref = next(it)
    wo_ref = next(it); bo_ref = next(it)
    g_ref = next(it); beta_ref = next(it)
    bias_ref = next(it) if has_bias else None
    o_ref = next(it)

    x = x_ref[0]                                   # (L, E)
    q_in = x + xpos_ref[0] if xpos_ref is not None else x
    kv = kv_ref[0]                                 # (S, E)
    k_in = kv + kvpos_ref[0] if kvpos_ref is not None else kv

    # projections (lane-dense, full-E minor dim)
    q = (jnp.dot(q_in, wq_ref[...], preferred_element_type=jnp.float32)
         + bq_ref[...]) * scale                    # scale on q, not on scores
    k = jnp.dot(k_in, wk_ref[...], preferred_element_type=jnp.float32) + bk_ref[...]
    v = jnp.dot(kv, wv_ref[...], preferred_element_type=jnp.float32) + bv_ref[...]

    E = x.shape[-1]
    Dh = E // nhead
    heads = []
    for h in range(nhead):                         # static unroll over heads
        lo, hi = h * Dh, (h + 1) * Dh
        qh, kh, vh = q[:, lo:hi], k[:, lo:hi], v[:, lo:hi]
        s = jax.lax.dot_general(qh, kh, (((1,), (1,)), ((), ())),
                                preferred_element_type=jnp.float32)   # (L, S)
        if bias_ref is not None:
            s = s + bias_ref[0]                    # (1, S) key-padding bias
        m = jnp.max(s, axis=-1, keepdims=True)
        p = jnp.exp(s - m)
        denom = jnp.sum(p, axis=-1, keepdims=True)
        heads.append(jnp.dot(p, vh, preferred_element_type=jnp.float32) / denom)
    attn = jnp.concatenate(heads, axis=-1)         # (L, E) lane-dense

    y = jnp.dot(attn, wo_ref[...], preferred_element_type=jnp.float32) + bo_ref[...]
    z = x + y
    o_ref[0] = _layernorm(z, g_ref[...], beta_ref[...], eps).astype(o_ref.dtype)


def _ffn_block_kernel(*refs, eps, emit_norm):
    """Fused: linear1 + ReLU + linear2 -> residual add -> LayerNorm
    [-> second output: final-norm(LayerNorm result)] for one batch element."""
    it = iter(refs)
    x_ref = next(it)
    w1_ref = next(it); b1_ref = next(it)
    w2_ref = next(it); b2_ref = next(it)
    g_ref = next(it); beta_ref = next(it)
    if emit_norm:
        fg_ref = next(it); fb_ref = next(it)
        o_ref = next(it); n_ref = next(it)
    else:
        o_ref = next(it)
        n_ref = fg_ref = fb_ref = None

    x = x_ref[0]                                   # (L, E)
    h = jnp.dot(x, w1_ref[...], preferred_element_type=jnp.float32) + b1_ref[...]
    h = jnp.maximum(h, 0.0)
    y = jnp.dot(h, w2_ref[...], preferred_element_type=jnp.float32) + b2_ref[...]
    z = _layernorm(x + y, g_ref[...], beta_ref[...], eps)
    o_ref[0] = z.astype(o_ref.dtype)
    if emit_norm:
        n_ref[0] = _layernorm(z, fg_ref[...], fb_ref[...], eps).astype(n_ref.dtype)


# ------------------------------ kernel wrappers ------------------------------ #
def attention_block(x, kv, wq, bq, wk, bk, wv, bv, wo, bo, gamma, beta, *,
                    nhead, xpos=None, kvpos=None, key_padding_bias=None,
                    self_attn=False, eps=1e-5):
    """x: (N, L, E) queries / residual base; kv: (N, S, E) key/value source.
    Returns LayerNorm(x + out_proj(MHA(x+xpos, kv+kvpos, kv)))  as (N, L, E)."""
    N, L, E = x.shape
    S = kv.shape[1]
    scale = 1.0 / math.sqrt(E // nhead)

    x_spec = pl.BlockSpec((1, L, E), lambda n: (n, 0, 0))
    kv_spec = pl.BlockSpec((1, S, E), lambda n: (n, 0, 0))
    w_spec = pl.BlockSpec((E, E), lambda n: (0, 0))
    vec_spec = pl.BlockSpec((1, E), lambda n: (0, 0))

    args = [x]
    in_specs = [x_spec]
    has_xpos = xpos is not None
    if has_xpos:
        args.append(xpos); in_specs.append(x_spec)
    has_kvpos = False
    if not self_attn:
        args.append(kv); in_specs.append(kv_spec)
        has_kvpos = kvpos is not None
        if has_kvpos:
            args.append(kvpos); in_specs.append(kv_spec)
    for w, b in ((wq, bq), (wk, bk), (wv, bv), (wo, bo)):
        args += [w, b]
        in_specs += [w_spec, vec_spec]
    args += [gamma, beta]
    in_specs += [vec_spec, vec_spec]
    has_bias = key_padding_bias is not None
    if has_bias:
        args.append(key_padding_bias)              # (N, 1, S)
        in_specs.append(pl.BlockSpec((1, 1, S), lambda n: (n, 0, 0)))

    kernel = functools.partial(_attn_block_kernel, nhead=nhead, scale=scale,
                               eps=eps, self_attn=self_attn, has_xpos=has_xpos,
                               has_kvpos=has_kvpos, has_bias=has_bias)
    return pl.pallas_call(
        kernel,
        out_shape=jax.ShapeDtypeStruct((N, L, E), jnp.float32),
        grid_spec=pltpu.PrefetchScalarGridSpec(
            num_scalar_prefetch=0, grid=(N,),
            in_specs=in_specs, out_specs=x_spec),
        compiler_params=pltpu.CompilerParams(
            dimension_semantics=("parallel",), vmem_limit_bytes=_VMEM_LIMIT),
    )(*args)


def ffn_block(x, w1, b1, w2, b2, gamma, beta, *, final_gamma=None,
              final_beta=None, eps=1e-5):
    """Returns (LayerNorm(x + lin2(relu(lin1(x)))),  optional final_norm(...))."""
    N, L, E = x.shape
    F = w1.shape[1]
    emit_norm = final_gamma is not None

    x_spec = pl.BlockSpec((1, L, E), lambda n: (n, 0, 0))
    e_spec = pl.BlockSpec((1, E), lambda n: (0, 0))
    in_specs = [x_spec,
                pl.BlockSpec((E, F), lambda n: (0, 0)),
                pl.BlockSpec((1, F), lambda n: (0, 0)),
                pl.BlockSpec((F, E), lambda n: (0, 0)),
                e_spec, e_spec, e_spec]
    args = [x, w1, b1, w2, b2, gamma, beta]
    if emit_norm:
        in_specs += [e_spec, e_spec]
        args += [final_gamma, final_beta]
        out_shape = [jax.ShapeDtypeStruct((N, L, E), jnp.float32),
                     jax.ShapeDtypeStruct((N, L, E), jnp.float32)]
        out_specs = [x_spec, x_spec]
    else:
        out_shape = jax.ShapeDtypeStruct((N, L, E), jnp.float32)
        out_specs = x_spec

    res = pl.pallas_call(
        functools.partial(_ffn_block_kernel, eps=eps, emit_norm=emit_norm),
        out_shape=out_shape,
        grid_spec=pltpu.PrefetchScalarGridSpec(
            num_scalar_prefetch=0, grid=(N,),
            in_specs=in_specs, out_specs=out_specs),
        compiler_params=pltpu.CompilerParams(
            dimension_semantics=("parallel",), vmem_limit_bytes=_VMEM_LIMIT),
    )(*args)
    if emit_norm:
        out, normed = res
        return out, normed
    return res, None


# --------------------------- parameter preparation --------------------------- #
def prepare_layer_params(p):
    """Hoist all weight splits / transposes / reshapes out of the layer loop."""
    E = p["sa_out_w"].shape[0]
    F = p["lin1_w"].shape[0]

    def split3(w, b):
        wq, wk, wv = jnp.split(w, 3, axis=0)
        bq, bk, bv = jnp.split(b, 3)
        return (wq.T, bq.reshape(1, E), wk.T, bk.reshape(1, E),
                wv.T, bv.reshape(1, E))

    sa = split3(p["sa_in_w"], p["sa_in_b"])
    ca = split3(p["ca_in_w"], p["ca_in_b"])
    return {
        "sa_wq": sa[0], "sa_bq": sa[1], "sa_wk": sa[2], "sa_bk": sa[3],
        "sa_wv": sa[4], "sa_bv": sa[5],
        "sa_wo": p["sa_out_w"].T, "sa_bo": p["sa_out_b"].reshape(1, E),
        "ca_wq": ca[0], "ca_bq": ca[1], "ca_wk": ca[2], "ca_bk": ca[3],
        "ca_wv": ca[4], "ca_bv": ca[5],
        "ca_wo": p["ca_out_w"].T, "ca_bo": p["ca_out_b"].reshape(1, E),
        "lin1_w": p["lin1_w"].T, "lin1_b": p["lin1_b"].reshape(1, F),
        "lin2_w": p["lin2_w"].T, "lin2_b": p["lin2_b"].reshape(1, E),
        "ln1_g": p["ln1_g"].reshape(1, E), "ln1_b": p["ln1_b"].reshape(1, E),
        "ln2_g": p["ln2_g"].reshape(1, E), "ln2_b": p["ln2_b"].reshape(1, E),
        "ln3_g": p["ln3_g"].reshape(1, E), "ln3_b": p["ln3_b"].reshape(1, E),
    }


# ------------------------- decoder layer / decoder --------------------------- #
def decoder_layer_forward(tgt, memory, p, *, nhead, query_pos=None, pos=None,
                          tgt_bias=None, mem_bias=None, final_norm=None, eps=1e-5):
    """tgt: (N, L, E), memory: (N, S, E). Returns (output, optional_final_norm)."""
    # self-attention block (proj -> attn -> out-proj -> +res -> LN), one kernel
    tgt = attention_block(tgt, tgt,
                          p["sa_wq"], p["sa_bq"], p["sa_wk"], p["sa_bk"],
                          p["sa_wv"], p["sa_bv"], p["sa_wo"], p["sa_bo"],
                          p["ln1_g"], p["ln1_b"], nhead=nhead, xpos=query_pos,
                          key_padding_bias=tgt_bias, self_attn=True, eps=eps)
    # cross-attention block, one kernel
    tgt = attention_block(tgt, memory,
                          p["ca_wq"], p["ca_bq"], p["ca_wk"], p["ca_bk"],
                          p["ca_wv"], p["ca_bv"], p["ca_wo"], p["ca_bo"],
                          p["ln2_g"], p["ln2_b"], nhead=nhead, xpos=query_pos,
                          kvpos=pos, key_padding_bias=mem_bias,
                          self_attn=False, eps=eps)
    # FFN block (+ optional fused final-norm intermediate), one kernel
    fg, fb = final_norm if final_norm is not None else (None, None)
    return ffn_block(tgt, p["lin1_w"], p["lin1_b"], p["lin2_w"], p["lin2_b"],
                     p["ln3_g"], p["ln3_b"], final_gamma=fg, final_beta=fb, eps=eps)


def transformer_decoder_forward(tgt, memory, layer_params, *, nhead,
                                norm_params=None, return_intermediate=False,
                                tgt_mask=None, memory_mask=None,
                                tgt_key_padding_mask=None,
                                memory_key_padding_mask=None,
                                pos=None, query_pos=None, eps=1e-5):
    """Pallas implementation of TransformerDecoder.forward (eval mode).
    Inputs/outputs use the PyTorch (seq, batch, embed) layout."""
    # TODO(synk): dense attn_mask (tgt_mask / memory_mask) unsupported — always
    # None in VisTR's decoder call.  Key-padding masks are supported.
    assert tgt_mask is None and memory_mask is None

    L, N, E = tgt.shape
    S = memory.shape[0]

    # One-time layout change to batch-major so each grid step owns one batch
    # element with lane-dense (rows, E) tiles.
    to_nb = lambda a: jnp.transpose(a, (1, 0, 2))
    tgt_b = to_nb(tgt)
    mem_b = to_nb(memory)
    qpos_b = to_nb(query_pos) if query_pos is not None else None
    pos_b = to_nb(pos) if pos is not None else None

    def kp_bias(mask, lk):
        if mask is None:
            return None
        return jnp.where(mask, jnp.float32(-1e30),
                         jnp.float32(0.0)).reshape(N, 1, lk)

    tgt_bias = kp_bias(tgt_key_padding_mask, L)
    mem_bias = kp_bias(memory_key_padding_mask, S)

    prepped = [prepare_layer_params(p) for p in layer_params]
    norm_prep = None
    if norm_params is not None:
        norm_prep = (jnp.asarray(norm_params[0], jnp.float32).reshape(1, E),
                     jnp.asarray(norm_params[1], jnp.float32).reshape(1, E))

    output = tgt_b
    normed = None
    intermediate = []
    n_layers = len(prepped)
    for li, p in enumerate(prepped):
        want_norm = norm_prep is not None and (return_intermediate or
                                               li == n_layers - 1)
        output, normed = decoder_layer_forward(
            output, mem_b, p, nhead=nhead, query_pos=qpos_b, pos=pos_b,
            tgt_bias=tgt_bias, mem_bias=mem_bias,
            final_norm=norm_prep if want_norm else None, eps=eps)
        if return_intermediate:
            # PyTorch spec calls self.norm(output) here (which would crash when
            # norm is None); we gracefully append the raw output in that case.
            intermediate.append(normed if normed is not None else output)

    if norm_prep is not None:
        output = normed                    # fused final norm from the last FFN kernel
        if return_intermediate:
            intermediate[-1] = output

    from_nb = lambda a: jnp.transpose(a, (1, 0, 2))
    if return_intermediate:
        return jnp.stack([from_nb(a) for a in intermediate])
    return from_nb(output)


# ------------------------------ parameter init ------------------------------- #
def init_decoder_layer_params(key, d_model, nhead, dim_feedforward):
    ks = jax.random.split(key, 10)
    s = 1.0 / math.sqrt(d_model)

    def w(k, shape, scale=s):
        return (scale * jax.random.normal(k, shape)).astype(jnp.float32)

    return {
        "sa_in_w": w(ks[0], (3 * d_model, d_model)),
        "sa_in_b": w(ks[1], (3 * d_model,), 0.02),
        "sa_out_w": w(ks[2], (d_model, d_model)),
        "sa_out_b": w(ks[3], (d_model,), 0.02),
        "ca_in_w": w(ks[4], (3 * d_model, d_model)),
        "ca_in_b": w(ks[5], (3 * d_model,), 0.02),
        "ca_out_w": w(ks[6], (d_model, d_model)),
        "ca_out_b": w(ks[7], (d_model,), 0.02),
        "lin1_w": w(ks[8], (dim_feedforward, d_model)),
        "lin1_b": jnp.zeros((dim_feedforward,), jnp.float32),
        "lin2_w": w(ks[9], (d_model, dim_feedforward), 1.0 / math.sqrt(dim_feedforward)),
        "lin2_b": jnp.zeros((d_model,), jnp.float32),
        "ln1_g": jnp.ones((d_model,), jnp.float32),
        "ln1_b": jnp.zeros((d_model,), jnp.float32),
        "ln2_g": jnp.ones((d_model,), jnp.float32),
        "ln2_b": jnp.zeros((d_model,), jnp.float32),
        "ln3_g": jnp.ones((d_model,), jnp.float32),
        "ln3_b": jnp.zeros((d_model,), jnp.float32),
    }


# ---------------------------- pure-JAX reference ----------------------------- #
def _ln_ref(x, g, b, eps=1e-5):
    mean = jnp.mean(x, axis=-1, keepdims=True)
    var = jnp.mean((x - mean) ** 2, axis=-1, keepdims=True)
    return (x - mean) / jnp.sqrt(var + eps) * g + b


def _mha_ref(q_in, k_in, v_in, in_w, in_b, out_w, out_b, nhead, key_padding_mask=None):
    Lq, N, E = q_in.shape
    Lk = k_in.shape[0]
    Dh = E // nhead
    wq, wk, wv = jnp.split(in_w, 3, axis=0)
    bq, bk, bv = jnp.split(in_b, 3)
    q = jnp.einsum("lne,fe->lnf", q_in, wq, precision=_PHI) + bq
    k = jnp.einsum("sne,fe->snf", k_in, wk, precision=_PHI) + bk
    v = jnp.einsum("sne,fe->snf", v_in, wv, precision=_PHI) + bv
    qh = q.reshape(Lq, N, nhead, Dh).transpose(1, 2, 0, 3)
    kh = k.reshape(Lk, N, nhead, Dh).transpose(1, 2, 0, 3)
    vh = v.reshape(Lk, N, nhead, Dh).transpose(1, 2, 0, 3)
    s = jnp.einsum("nhld,nhsd->nhls", qh, kh, precision=_PHI) / math.sqrt(Dh)
    if key_padding_mask is not None:
        s = s + jnp.where(key_padding_mask, -1e30, 0.0)[:, None, None, :]
    a = jax.nn.softmax(s, axis=-1)
    o = jnp.einsum("nhls,nhsd->nhld", a, vh, precision=_PHI)
    o = o.transpose(2, 0, 1, 3).reshape(Lq, N, E)
    return jnp.einsum("lne,fe->lnf", o, out_w, precision=_PHI) + out_b


def _decoder_layer_ref(tgt, memory, p, *, nhead, pos, query_pos, tgt_kpm, mem_kpm):
    def wp(x, pe):
        return x if pe is None else x + pe

    q_in = wp(tgt, query_pos)
    sa = _mha_ref(q_in, q_in, tgt, p["sa_in_w"], p["sa_in_b"],
                  p["sa_out_w"], p["sa_out_b"], nhead, tgt_kpm)
    tgt = _ln_ref(tgt + sa, p["ln1_g"], p["ln1_b"])
    ca = _mha_ref(wp(tgt, query_pos), wp(memory, pos), memory,
                  p["ca_in_w"], p["ca_in_b"], p["ca_out_w"], p["ca_out_b"],
                  nhead, mem_kpm)
    tgt = _ln_ref(tgt + ca, p["ln2_g"], p["ln2_b"])
    h = jnp.maximum(jnp.einsum("lne,fe->lnf", tgt, p["lin1_w"], precision=_PHI)
                    + p["lin1_b"], 0.0)
    ff = jnp.einsum("lnf,ef->lne", h, p["lin2_w"], precision=_PHI) + p["lin2_b"]
    return _ln_ref(tgt + ff, p["ln3_g"], p["ln3_b"])


def transformer_decoder_ref(tgt, memory, layer_params, *, nhead, norm_params=None,
                            return_intermediate=False, tgt_key_padding_mask=None,
                            memory_key_padding_mask=None, pos=None, query_pos=None):
    output = tgt
    intermediate = []
    for p in layer_params:
        output = _decoder_layer_ref(output, memory, p, nhead=nhead, pos=pos,
                                    query_pos=query_pos,
                                    tgt_kpm=tgt_key_padding_mask,
                                    mem_kpm=memory_key_padding_mask)
        if return_intermediate:
            if norm_params is not None:
                intermediate.append(_ln_ref(output, norm_params[0], norm_params[1]))
            else:
                intermediate.append(output)
    if norm_params is not None:
        output = _ln_ref(output, norm_params[0], norm_params[1])
        if return_intermediate:
            intermediate.pop()
            intermediate.append(output)
    if return_intermediate:
        return jnp.stack(intermediate)
    return output


# ------------------------------------ demo ----------------------------------- #
if __name__ == "__main__":
    num_layers = 2
    d_model = 32
    nhead = 4
    dim_ff = 64
    L = 8      # number of object queries (tgt length)
    S = 16     # memory length (flattened encoder features)
    N = 2      # batch

    key = jax.random.PRNGKey(0)
    keys = jax.random.split(key, num_layers + 7)
    layer_params = [init_decoder_layer_params(keys[i], d_model, nhead, dim_ff)
                    for i in range(num_layers)]
    norm_g = (1.0 + 0.1 * jax.random.normal(keys[num_layers], (d_model,))).astype(jnp.float32)
    norm_b = (0.1 * jax.random.normal(keys[num_layers + 1], (d_model,))).astype(jnp.float32)

    tgt = 0.1 * jax.random.normal(keys[num_layers + 2], (L, N, d_model), jnp.float32)
    memory = jax.random.normal(keys[num_layers + 3], (S, N, d_model), jnp.float32)
    query_pos = jax.random.normal(keys[num_layers + 4], (L, N, d_model), jnp.float32)
    pos = jax.random.normal(keys[num_layers + 5], (S, N, d_model), jnp.float32)
    mem_kpm = jax.random.bernoulli(keys[num_layers + 6], 0.2, (N, S))
    mem_kpm = mem_kpm.at[:, 0].set(False)   # at least one valid key per batch row

    # --- case 1: return_intermediate=True with final norm (VisTR config) ---
    out = transformer_decoder_forward(
        tgt, memory, layer_params, nhead=nhead,
        norm_params=(norm_g, norm_b), return_intermediate=True,
        memory_key_padding_mask=mem_kpm, pos=pos, query_pos=query_pos)
    out = jax.block_until_ready(out)
    ref = transformer_decoder_ref(
        tgt, memory, layer_params, nhead=nhead,
        norm_params=(norm_g, norm_b), return_intermediate=True,
        memory_key_padding_mask=mem_kpm, pos=pos, query_pos=query_pos)
    assert out.shape == (num_layers, L, N, d_model), out.shape
    assert out.dtype == jnp.float32
    err = float(jnp.max(jnp.abs(out - ref)))
    assert jnp.allclose(out, ref, atol=2e-3, rtol=2e-3), f"mismatch (case 1): {err}"

    # --- case 2: no norm, final output only, no masks ---
    out2 = transformer_decoder_forward(
        tgt, memory, layer_params, nhead=nhead,
        norm_params=None, return_intermediate=False,
        pos=pos, query_pos=query_pos)
    out2 = jax.block_until_ready(out2)
    ref2 = transformer_decoder_ref(
        tgt, memory, layer_params, nhead=nhead,
        norm_params=None, return_intermediate=False,
        pos=pos, query_pos=query_pos)
    assert out2.shape == (L, N, d_model), out2.shape
    err2 = float(jnp.max(jnp.abs(out2 - ref2)))
    assert jnp.allclose(out2, ref2, atol=2e-3, rtol=2e-3), f"mismatch (case 2): {err2}"

    print("KERNEL_OK")
</pallas_src>

<mosaic_0001>
module attributes {stable_mosaic.version = 11 : i64} {
  func.func @_attn_block_kernel(%arg0: i32, %arg1: memref<1x8x32xf32, #tpu.memory_space<vmem>>, %arg2: memref<1x8x32xf32, #tpu.memory_space<vmem>>, %arg3: memref<32x32xf32, #tpu.memory_space<vmem>>, %arg4: memref<1x32xf32, #tpu.memory_space<vmem>>, %arg5: memref<32x32xf32, #tpu.memory_space<vmem>>, %arg6: memref<1x32xf32, #tpu.memory_space<vmem>>, %arg7: memref<32x32xf32, #tpu.memory_space<vmem>>, %arg8: memref<1x32xf32, #tpu.memory_space<vmem>>, %arg9: memref<32x32xf32, #tpu.memory_space<vmem>>, %arg10: memref<1x32xf32, #tpu.memory_space<vmem>>, %arg11: memref<1x32xf32, #tpu.memory_space<vmem>>, %arg12: memref<1x32xf32, #tpu.memory_space<vmem>>, %arg13: memref<1x8x32xf32, #tpu.memory_space<vmem>>) attributes {dimension_semantics = [#tpu.dimension_semantics<parallel>], iteration_bounds = array<i64: 2>, scalar_prefetch = 0 : i64, scratch_operands = 0 : i64, tpu.core_type = #tpu.core_type<tc>, window_params = [{transform_indices = @transform_0, window_bounds = array<i64: 1, 8, 32>}, {transform_indices = @transform_1, window_bounds = array<i64: 1, 8, 32>}, {pipeline_mode = #tpu.pipeline_mode<synchronous>, transform_indices = @transform_2, window_bounds = array<i64: 32, 32>}, {pipeline_mode = #tpu.pipeline_mode<synchronous>, transform_indices = @transform_3, window_bounds = array<i64: 1, 32>}, {pipeline_mode = #tpu.pipeline_mode<synchronous>, transform_indices = @transform_4, window_bounds = array<i64: 32, 32>}, {pipeline_mode = #tpu.pipeline_mode<synchronous>, transform_indices = @transform_5, window_bounds = array<i64: 1, 32>}, {pipeline_mode = #tpu.pipeline_mode<synchronous>, transform_indices = @transform_6, window_bounds = array<i64: 32, 32>}, {pipeline_mode = #tpu.pipeline_mode<synchronous>, transform_indices = @transform_7, window_bounds = array<i64: 1, 32>}, {pipeline_mode = #tpu.pipeline_mode<synchronous>, transform_indices = @transform_8, window_bounds = array<i64: 32, 32>}, {pipeline_mode = #tpu.pipeline_mode<synchronous>, transform_indices = @transform_9, window_bounds = array<i64: 1, 32>}, {pipeline_mode = #tpu.pipeline_mode<synchronous>, transform_indices = @transform_10, window_bounds = array<i64: 1, 32>}, {pipeline_mode = #tpu.pipeline_mode<synchronous>, transform_indices = @transform_11, window_bounds = array<i64: 1, 32>}, {transform_indices = @transform_12, window_bounds = array<i64: 1, 8, 32>}]} {
    %c0 = arith.constant 0 : index
    %c0_0 = arith.constant 0 : index
    %c0_1 = arith.constant 0 : index
    %0 = vector.load %arg1[%c0, %c0_0, %c0_1] : memref<1x8x32xf32, #tpu.memory_space<vmem>>, vector<1x8x32xf32>
    %1 = vector.shape_cast %0 : vector<1x8x32xf32> to vector<8x32xf32>
    %c0_2 = arith.constant 0 : index
    %c0_3 = arith.constant 0 : index
    %c0_4 = arith.constant 0 : index
    %2 = vector.load %arg2[%c0_2, %c0_3, %c0_4] : memref<1x8x32xf32, #tpu.memory_space<vmem>>, vector<1x8x32xf32>
    %3 = vector.shape_cast %2 : vector<1x8x32xf32> to vector<8x32xf32>
    %4 = arith.addf %1, %3 : vector<8x32xf32>
    %c0_5 = arith.constant 0 : index
    %c0_6 = arith.constant 0 : index
    %c0_7 = arith.constant 0 : index
    %5 = vector.load %arg1[%c0_5, %c0_6, %c0_7] : memref<1x8x32xf32, #tpu.memory_space<vmem>>, vector<1x8x32xf32>
    %6 = vector.shape_cast %5 : vector<1x8x32xf32> to vector<8x32xf32>
    %c0_8 = arith.constant 0 : index
    %c0_9 = arith.constant 0 : index
    %c0_10 = arith.constant 0 : index
    %7 = vector.load %arg2[%c0_8, %c0_9, %c0_10] : memref<1x8x32xf32, #tpu.memory_space<vmem>>, vector<1x8x32xf32>
    %8 = vector.shape_cast %7 : vector<1x8x32xf32> to vector<8x32xf32>
    %9 = arith.addf %6, %8 : vector<8x32xf32>
    %c0_11 = arith.constant 0 : index
    %c0_12 = arith.constant 0 : index
    %10 = vector.load %arg3[%c0_11, %c0_12] : memref<32x32xf32, #tpu.memory_space<vmem>>, vector<32x32xf32>
    %cst = arith.constant dense<0.000000e+00> : vector<8x32xf32>
    %11 = tpu.matmul %4, %10, %cst {dimension_numbers = #tpu.dot_dimension_numbers<[1], [0], [0], [1], [0, 0, 1, 1], [], []>} : vector<8x32xf32>, vector<32x32xf32>, vector<8x32xf32> -> vector<8x32xf32>
    %c0_13 = arith.constant 0 : index
    %c0_14 = arith.constant 0 : index
    %12 = vector.load %arg4[%c0_13, %c0_14] : memref<1x32xf32, #tpu.memory_space<vmem>>, vector<1x32xf32>
    %13 = vector.broadcast %12 : vector<1x32xf32> to vector<8x32xf32>
    %14 = arith.addf %11, %13 : vector<8x32xf32>
    %cst_15 = arith.constant 0.353553385 : f32
    %15 = vector.broadcast %cst_15 : f32 to vector<8x32xf32>
    %16 = arith.mulf %14, %15 : vector<8x32xf32>
    %c0_16 = arith.constant 0 : index
    %c0_17 = arith.constant 0 : index
    %17 = vector.load %arg5[%c0_16, %c0_17] : memref<32x32xf32, #tpu.memory_space<vmem>>, vector<32x32xf32>
    %cst_18 = arith.constant dense<0.000000e+00> : vector<8x32xf32>
    %18 = tpu.matmul %9, %17, %cst_18 {dimension_numbers = #tpu.dot_dimension_numbers<[1], [0], [0], [1], [0, 0, 1, 1], [], []>} : vector<8x32xf32>, vector<32x32xf32>, vector<8x32xf32> -> vector<8x32xf32>
    %c0_19 = arith.constant 0 : index
    %c0_20 = arith.constant 0 : index
    %19 = vector.load %arg6[%c0_19, %c0_20] : memref<1x32xf32, #tpu.memory_space<vmem>>, vector<1x32xf32>
    %20 = vector.broadcast %19 : vector<1x32xf32> to vector<8x32xf32>
    %21 = arith.addf %18, %20 : vector<8x32xf32>
    %c0_21 = arith.constant 0 : index
    %c0_22 = arith.constant 0 : index
    %22 = vector.load %arg7[%c0_21, %c0_22] : memref<32x32xf32, #tpu.memory_space<vmem>>, vector<32x32xf32>
    %cst_23 = arith.constant dense<0.000000e+00> : vector<8x32xf32>
    %23 = tpu.matmul %6, %22, %cst_23 {dimension_numbers = #tpu.dot_dimension_numbers<[1], [0], [0], [1], [0, 0, 1, 1], [], []>} : vector<8x32xf32>, vector<32x32xf32>, vector<8x32xf32> -> vector<8x32xf32>
    %c0_24 = arith.constant 0 : index
    %c0_25 = arith.constant 0 : index
    %24 = vector.load %arg8[%c0_24, %c0_25] : memref<1x32xf32, #tpu.memory_space<vmem>>, vector<1x32xf32>
    %25 = vector.broadcast %24 : vector<1x32xf32> to vector<8x32xf32>
    %26 = arith.addf %23, %25 : vector<8x32xf32>
    %27 = vector.extract_strided_slice %16 {offsets = [0, 0], sizes = [8, 8], strides = [1, 1]} : vector<8x32xf32> to vector<8x8xf32>
    %28 = vector.extract_strided_slice %21 {offsets = [0, 0], sizes = [8, 8], strides = [1, 1]} : vector<8x32xf32> to vector<8x8xf32>
    %29 = vector.extract_strided_slice %26 {offsets = [0, 0], sizes = [8, 8], strides = [1, 1]} : vector<8x32xf32> to vector<8x8xf32>
    %cst_26 = arith.constant dense<0.000000e+00> : vector<8x8xf32>
    %30 = tpu.matmul %27, %28, %cst_26 {dimension_numbers = #tpu.dot_dimension_numbers<[1], [1], [0], [0], [0, 0, 1, 0], [], []>} : vector<8x8xf32>, vector<8x8xf32>, vector<8x8xf32> -> vector<8x8xf32>
    %cst_27 = arith.constant dense<0xFF800000> : vector<8xf32>
    %31 = vector.multi_reduction <maximumf>, %30, %cst_27 [1] : vector<8x8xf32> to vector<8xf32>
    %32 = vector.shape_cast %31 : vector<8xf32> to vector<8x1xf32>
    %33 = vector.broadcast %32 : vector<8x1xf32> to vector<8x8xf32>
    %34 = arith.subf %30, %33 : vector<8x8xf32>
    %35 = math.exp %34 : vector<8x8xf32>
    %cst_28 = arith.constant dense<0.000000e+00> : vector<8xf32>
    %36 = vector.multi_reduction <add>, %35, %cst_28 [1] : vector<8x8xf32> to vector<8xf32>
    %37 = vector.shape_cast %36 : vector<8xf32> to vector<8x1xf32>
    %cst_29 = arith.constant dense<0.000000e+00> : vector<8x8xf32>
    %38 = tpu.matmul %35, %29, %cst_29 {dimension_numbers = #tpu.dot_dimension_numbers<[1], [0], [0], [1], [0, 0, 1, 1], [], []>} : vector<8x8xf32>, vector<8x8xf32>, vector<8x8xf32> -> vector<8x8xf32>
    %39 = vector.broadcast %37 : vector<8x1xf32> to vector<8x8xf32>
    %40 = arith.divf %38, %39 : vector<8x8xf32>
    %41 = vector.extract_strided_slice %16 {offsets = [0, 8], sizes = [8, 8], strides = [1, 1]} : vector<8x32xf32> to vector<8x8xf32>
    %42 = vector.extract_strided_slice %21 {offsets = [0, 8], sizes = [8, 8], strides = [1, 1]} : vector<8x32xf32> to vector<8x8xf32>
    %43 = vector.extract_strided_slice %26 {offsets = [0, 8], sizes = [8, 8], strides = [1, 1]} : vector<8x32xf32> to vector<8x8xf32>
    %cst_30 = arith.constant dense<0.000000e+00> : vector<8x8xf32>
    %44 = tpu.matmul %41, %42, %cst_30 {dimension_numbers = #tpu.dot_dimension_numbers<[1], [1], [0], [0], [0, 0, 1, 0], [], []>} : vector<8x8xf32>, vector<8x8xf32>, vector<8x8xf32> -> vector<8x8xf32>
    %cst_31 = arith.constant dense<0xFF800000> : vector<8xf32>
    %45 = vector.multi_reduction <maximumf>, %44, %cst_31 [1] : vector<8x8xf32> to vector<8xf32>
    %46 = vector.shape_cast %45 : vector<8xf32> to vector<8x1xf32>
    %47 = vector.broadcast %46 : vector<8x1xf32> to vector<8x8xf32>
    %48 = arith.subf %44, %47 : vector<8x8xf32>
    %49 = math.exp %48 : vector<8x8xf32>
    %cst_32 = arith.constant dense<0.000000e+00> : vector<8xf32>
    %50 = vector.multi_reduction <add>, %49, %cst_32 [1] : vector<8x8xf32> to vector<8xf32>
    %51 = vector.shape_cast %50 : vector<8xf32> to vector<8x1xf32>
    %cst_33 = arith.constant dense<0.000000e+00> : vector<8x8xf32>
    %52 = tpu.matmul %49, %43, %cst_33 {dimension_numbers = #tpu.dot_dimension_numbers<[1], [0], [0], [1], [0, 0, 1, 1], [], []>} : vector<8x8xf32>, vector<8x8xf32>, vector<8x8xf32> -> vector<8x8xf32>
    %53 = vector.broadcast %51 : vector<8x1xf32> to vector<8x8xf32>
    %54 = arith.divf %52, %53 : vector<8x8xf32>
    %55 = vector.extract_strided_slice %16 {offsets = [0, 16], sizes = [8, 8], strides = [1, 1]} : vector<8x32xf32> to vector<8x8xf32>
    %56 = vector.extract_strided_slice %21 {offsets = [0, 16], sizes = [8, 8], strides = [1, 1]} : vector<8x32xf32> to vector<8x8xf32>
    %57 = vector.extract_strided_slice %26 {offsets = [0, 16], sizes = [8, 8], strides = [1, 1]} : vector<8x32xf32> to vector<8x8xf32>
    %cst_34 = arith.constant dense<0.000000e+00> : vector<8x8xf32>
    %58 = tpu.matmul %55, %56, %cst_34 {dimension_numbers = #tpu.dot_dimension_numbers<[1], [1], [0], [0], [0, 0, 1, 0], [], []>} : vector<8x8xf32>, vector<8x8xf32>, vector<8x8xf32> -> vector<8x8xf32>
    %cst_35 = arith.constant dense<0xFF800000> : vector<8xf32>
    %59 = vector.multi_reduction <maximumf>, %58, %cst_35 [1] : vector<8x8xf32> to vector<8xf32>
    %60 = vector.shape_cast %59 : vector<8xf32> to vector<8x1xf32>
    %61 = vector.broadcast %60 : vector<8x1xf32> to vector<8x8xf32>
    %62 = arith.subf %58, %61 : vector<8x8xf32>
    %63 = math.exp %62 : vector<8x8xf32>
    %cst_36 = arith.constant dense<0.000000e+00> : vector<8xf32>
    %64 = vector.multi_reduction <add>, %63, %cst_36 [1] : vector<8x8xf32> to vector<8xf32>
    %65 = vector.shape_cast %64 : vector<8xf32> to vector<8x1xf32>
    %cst_37 = arith.constant dense<0.000000e+00> : vector<8x8xf32>
    %66 = tpu.matmul %63, %57, %cst_37 {dimension_numbers = #tpu.dot_dimension_numbers<[1], [0], [0], [1], [0, 0, 1, 1], [], []>} : vector<8x8xf32>, vector<8x8xf32>, vector<8x8xf32> -> vector<8x8xf32>
    %67 = vector.broadcast %65 : vector<8x1xf32> to vector<8x8xf32>
    %68 = arith.divf %66, %67 : vector<8x8xf32>
    %69 = vector.extract_strided_slice %16 {offsets = [0, 24], sizes = [8, 8], strides = [1, 1]} : vector<8x32xf32> to vector<8x8xf32>
    %70 = vector.extract_strided_slice %21 {offsets = [0, 24], sizes = [8, 8], strides = [1, 1]} : vector<8x32xf32> to vector<8x8xf32>
    %71 = vector.extract_strided_slice %26 {offsets = [0, 24], sizes = [8, 8], strides = [1, 1]} : vector<8x32xf32> to vector<8x8xf32>
    %cst_38 = arith.constant dense<0.000000e+00> : vector<8x8xf32>
    %72 = tpu.matmul %69, %70, %cst_38 {dimension_numbers = #tpu.dot_dimension_numbers<[1], [1], [0], [0], [0, 0, 1, 0], [], []>} : vector<8x8xf32>, vector<8x8xf32>, vector<8x8xf32> -> vector<8x8xf32>
    %cst_39 = arith.constant dense<0xFF800000> : vector<8xf32>
    %73 = vector.multi_reduction <maximumf>, %72, %cst_39 [1] : vector<8x8xf32> to vector<8xf32>
    %74 = vector.shape_cast %73 : vector<8xf32> to vector<8x1xf32>
    %75 = vector.broadcast %74 : vector<8x1xf32> to vector<8x8xf32>
    %76 = arith.subf %72, %75 : vector<8x8xf32>
    %77 = math.exp %76 : vector<8x8xf32>
    %cst_40 = arith.constant dense<0.000000e+00> : vector<8xf32>
    %78 = vector.multi_reduction <add>, %77, %cst_40 [1] : vector<8x8xf32> to vector<8xf32>
    %79 = vector.shape_cast %78 : vector<8xf32> to vector<8x1xf32>
    %cst_41 = arith.constant dense<0.000000e+00> : vector<8x8xf32>
    %80 = tpu.matmul %77, %71, %cst_41 {dimension_numbers = #tpu.dot_dimension_numbers<[1], [0], [0], [1], [0, 0, 1, 1], [], []>} : vector<8x8xf32>, vector<8x8xf32>, vector<8x8xf32> -> vector<8x8xf32>
    %81 = vector.broadcast %79 : vector<8x1xf32> to vector<8x8xf32>
    %82 = arith.divf %80, %81 : vector<8x8xf32>
    %83 = tpu.concatenate %40, %54, %68, %82 in 1 : vector<8x8xf32>, vector<8x8xf32>, vector<8x8xf32>, vector<8x8xf32> -> vector<8x32xf32>
    %c0_42 = arith.constant 0 : index
    %c0_43 = arith.constant 0 : index
    %84 = vector.load %arg9[%c0_42, %c0_43] : memref<32x32xf32, #tpu.memory_space<vmem>>, vector<32x32xf32>
    %cst_44 = arith.constant dense<0.000000e+00> : vector<8x32xf32>
    %85 = tpu.matmul %83, %84, %cst_44 {dimension_numbers = #tpu.dot_dimension_numbers<[1], [0], [0], [1], [0, 0, 1, 1], [], []>} : vector<8x32xf32>, vector<32x32xf32>, vector<8x32xf32> -> vector<8x32xf32>
    %c0_45 = arith.constant 0 : index
    %c0_46 = arith.constant 0 : index
    %86 = vector.load %arg10[%c0_45, %c0_46] : memref<1x32xf32, #tpu.memory_space<vmem>>, vector<1x32xf32>
    %87 = vector.broadcast %86 : vector<1x32xf32> to vector<8x32xf32>
    %88 = arith.addf %85, %87 : vector<8x32xf32>
    %89 = arith.addf %1, %88 : vector<8x32xf32>
    %c0_47 = arith.constant 0 : index
    %c0_48 = arith.constant 0 : index
    %90 = vector.load %arg11[%c0_47, %c0_48] : memref<1x32xf32, #tpu.memory_space<vmem>>, vector<1x32xf32>
    %c0_49 = arith.constant 0 : index
    %c0_50 = arith.constant 0 : index
    %91 = vector.load %arg12[%c0_49, %c0_50] : memref<1x32xf32, #tpu.memory_space<vmem>>, vector<1x32xf32>
    %cst_51 = arith.constant dense<0.000000e+00> : vector<8xf32>
    %92 = vector.multi_reduction <add>, %89, %cst_51 [1] : vector<8x32xf32> to vector<8xf32>
    %93 = vector.shape_cast %92 : vector<8xf32> to vector<8x1xf32>
    %cst_52 = arith.constant 3.200000e+01 : f32
    %94 = vector.broadcast %cst_52 : f32 to vector<8x1xf32>
    %95 = arith.divf %93, %94 : vector<8x1xf32>
    %96 = vector.broadcast %95 : vector<8x1xf32> to vector<8x32xf32>
    %97 = arith.subf %89, %96 : vector<8x32xf32>
    %98 = arith.mulf %97, %97 : vector<8x32xf32>
    %cst_53 = arith.constant dense<0.000000e+00> : vector<8xf32>
    %99 = vector.multi_reduction <add>, %98, %cst_53 [1] : vector<8x32xf32> to vector<8xf32>
    %100 = vector.shape_cast %99 : vector<8xf32> to vector<8x1xf32>
    %cst_54 = arith.constant 3.200000e+01 : f32
    %101 = vector.broadcast %cst_54 : f32 to vector<8x1xf32>
    %102 = arith.divf %100, %101 : vector<8x1xf32>
    %cst_55 = arith.constant 9.99999974E-6 : f32
    %103 = vector.broadcast %cst_55 : f32 to vector<8x1xf32>
    %104 = arith.addf %102, %103 : vector<8x1xf32>
    %105 = math.rsqrt %104 : vector<8x1xf32>
    %106 = vector.broadcast %105 : vector<8x1xf32> to vector<8x32xf32>
    %107 = arith.mulf %97, %106 : vector<8x32xf32>
    %108 = vector.broadcast %90 : vector<1x32xf32> to vector<8x32xf32>
    %109 = arith.mulf %107, %108 : vector<8x32xf32>
    %110 = vector.broadcast %91 : vector<1x32xf32> to vector<8x32xf32>
    %111 = arith.addf %109, %110 : vector<8x32xf32>
    %c0_56 = arith.constant 0 : index
    %c0_57 = arith.constant 0 : index
    %c0_58 = arith.constant 0 : index
    %112 = vector.load %arg13[%c0_56, %c0_57, %c0_58] : memref<1x8x32xf32, #tpu.memory_space<vmem>>, vector<1x8x32xf32>
    %113 = vector.shape_cast %112 : vector<1x8x32xf32> to vector<8x32xf32>
    %114 = vector.shape_cast %111 : vector<8x32xf32> to vector<1x8x32xf32>
    tpu.vector_store %arg13[%c0_56, %c0_57, %c0_58], %114 {strides = array<i32>} : memref<1x8x32xf32, #tpu.memory_space<vmem>>, vector<1x8x32xf32>,
    return
  }
  func.func @transform_0(%arg0: i32) -> (i32, i32, i32) {
    %c0_i32 = arith.constant 0 : i32
    %c0_i32_0 = arith.constant 0 : i32
    %c0_i32_1 = arith.constant 0 : i32
    return %arg0, %c0_i32, %c0_i32_0 : i32, i32, i32
  }
  func.func @transform_1(%arg0: i32) -> (i32, i32, i32) {
    %c0_i32 = arith.constant 0 : i32
    %c0_i32_0 = arith.constant 0 : i32
    %c0_i32_1 = arith.constant 0 : i32
    return %arg0, %c0_i32, %c0_i32_0 : i32, i32, i32
  }
  func.func @transform_2(%arg0: i32) -> (i32, i32) {
    %c0_i32 = arith.constant 0 : i32
    %c0_i32_0 = arith.constant 0 : i32
    %c0_i32_1 = arith.constant 0 : i32
    return %c0_i32, %c0_i32_0 : i32, i32
  }
  func.func @transform_3(%arg0: i32) -> (i32, i32) {
    %c0_i32 = arith.constant 0 : i32
    %c0_i32_0 = arith.constant 0 : i32
    %c0_i32_1 = arith.constant 0 : i32
    return %c0_i32, %c0_i32_0 : i32, i32
  }
  func.func @transform_4(%arg0: i32) -> (i32, i32) {
    %c0_i32 = arith.constant 0 : i32
    %c0_i32_0 = arith.constant 0 : i32
    %c0_i32_1 = arith.constant 0 : i32
    return %c0_i32, %c0_i32_0 : i32, i32
  }
  func.func @transform_5(%arg0: i32) -> (i32, i32) {
    %c0_i32 = arith.constant 0 : i32
    %c0_i32_0 = arith.constant 0 : i32
    %c0_i32_1 = arith.constant 0 : i32
    return %c0_i32, %c0_i32_0 : i32, i32
  }
  func.func @transform_6(%arg0: i32) -> (i32, i32) {
    %c0_i32 = arith.constant 0 : i32
    %c0_i32_0 = arith.constant 0 : i32
    %c0_i32_1 = arith.constant 0 : i32
    return %c0_i32, %c0_i32_0 : i32, i32
  }
  func.func @transform_7(%arg0: i32) -> (i32, i32) {
    %c0_i32 = arith.constant 0 : i32
    %c0_i32_0 = arith.constant 0 : i32
    %c0_i32_1 = arith.constant 0 : i32
    return %c0_i32, %c0_i32_0 : i32, i32
  }
  func.func @transform_8(%arg0: i32) -> (i32, i32) {
    %c0_i32 = arith.constant 0 : i32
    %c0_i32_0 = arith.constant 0 : i32
    %c0_i32_1 = arith.constant 0 : i32
    return %c0_i32, %c0_i32_0 : i32, i32
  }
  func.func @transform_9(%arg0: i32) -> (i32, i32) {
    %c0_i32 = arith.constant 0 : i32
    %c0_i32_0 = arith.constant 0 : i32
    %c0_i32_1 = arith.constant 0 : i32
    return %c0_i32, %c0_i32_0 : i32, i32
  }
  func.func @transform_10(%arg0: i32) -> (i32, i32) {
    %c0_i32 = arith.constant 0 : i32
    %c0_i32_0 = arith.constant 0 : i32
    %c0_i32_1 = arith.constant 0 : i32
    return %c0_i32, %c0_i32_0 : i32, i32
  }
  func.func @transform_11(%arg0: i32) -> (i32, i32) {
    %c0_i32 = arith.constant 0 : i32
    %c0_i32_0 = arith.constant 0 : i32
    %c0_i32_1 = arith.constant 0 : i32
    return %c0_i32, %c0_i32_0 : i32, i32
  }
  func.func @transform_12(%arg0: i32) -> (i32, i32, i32) {
    %c0_i32 = arith.constant 0 : i32
    %c0_i32_0 = arith.constant 0 : i32
    %c0_i32_1 = arith.constant 0 : i32
    return %arg0, %c0_i32, %c0_i32_0 : i32, i32, i32
  }
}

</mosaic_0001>

<bundles_post_ra>
// kernel: tpu_custom_call.1
= control target key start
LH: loop header
LB: loop body
LE: loop exit
PB: predicated region body
PF: predicated region fallthrough
CT: control target
= control target key end

     0   :  { %s1947_s0 = inlined_call_operand.hbm [shape: f32[2,8,32], index: 0, kind: input, shape index: {}]   ;;  %s1948_s1 = inlined_call_operand.hbm [shape: f32[2,8,32], index: 1, kind: input, shape index: {}]   ;;  %s1949_s2 = inlined_call_operand.hbm [shape: f32[32,32], index: 2, kind: input, shape index: {}]   ;;  %s1950_s3 = inlined_call_operand.vmem [shape: f32[1,32], index: 3, kind: input, shape index: {}]   ;;  %s1951_s4 = inlined_call_operand.hbm [shape: f32[32,32], index: 4, kind: input, shape index: {}]   ;;  %s1952_s5 = inlined_call_operand.vmem [shape: f32[1,32], index: 5, kind: input, shape index: {}]   ;;  %s1953_s6 = inlined_call_operand.hbm [shape: f32[32,32], index: 6, kind: input, shape index: {}]   ;;  %s1954_s7 = inlined_call_operand.vmem [shape: f32[1,32], index: 7, kind: input, shape index: {}]   ;;  %s1955_s8 = inlined_call_operand.hbm [shape: f32[32,32], index: 8, kind: input, shape index: {}]   ;;  %s1956_s9 = inlined_call_operand.vmem [shape: f32[1,32], index: 9, kind: input, shape index: {}]   ;;  %s1957_s10 = inlined_call_operand.vmem [shape: f32[1,32], index: 10, kind: input, shape index: {}]   ;;  %s1958_s11 = inlined_call_operand.vmem [shape: f32[1,32], index: 11, kind: input, shape index: {}]   ;;  %s1959_s12 = inlined_call_operand.hbm [shape: f32[2,8,32], index: 12, kind: output, shape index: {}]  }
   0x1   :  { %1966 = sst [smem:[#allocation26_spill]] %s1949_s2 }
   0x2   :  { %1967 = sst [smem:[#allocation27_spill]] %s1951_s4 }
   0x3   :  { %1968 = sst [smem:[#allocation28_spill]] %s1953_s6 }
   0x4   :  { %1969 = sst [smem:[#allocation29_spill]] %s1955_s8 }
   0x5   :  { %1970 = sst [smem:[#allocation30_spill]] %s1958_s11 }
   0x6   :  { %17 = vsyncpa [#allocation3], 0 }
   0x7   :  { %19 = vsyncpa [#allocation3 + $0x1], 0 }
   0x8   :  { %20 = vsyncpa [#allocation6], 0 }
   0x9   :  { %22 = vsyncpa [#allocation6 + $0x1], 0 }
   0xa   :  { %23 = vsyncpa [#allocation9], 0 }
   0xb   :  { %24 = vsyncpa [#allocation12], 0 }
   0xc   :  { %25 = vsyncpa [#allocation4], 0 }
   0xd   :  { %27 = vsyncpa [#allocation4 + $0x1], 0  ;;  %s1684_s21 = smov 0   ;;  %s1686_s22 = smov 0  }
   0xe   :  { %s1688_s23 = smov 0   ;;  %s1690_s24 = smov 0  }
   0xf LB: > { %1971 = sst [smem:[#allocation20_spill]] %s1592_s21  ;;  %s1708_s28 = sadd.s32 4294967295, %s1604_s24   ;;  %s1604_s24 = sphi %s1690_s24, %s1993_s24   ;;  %s1600_s23 = sphi %s1688_s23, %s1995_s23   ;;  %s1596_s22 = sphi %s1686_s22, %s1997_s22   ;;  %s1592_s21 = sphi %s1684_s21, %s1996_s21  }
  0x10   : > { %1972 = sst [smem:[#allocation21_spill]] %s1600_s23  ;;  %p1177_p0 = scmp.ge.s32.totalorder %s1604_s24, 1 }
  0x11   : > { %1973 = sst [smem:[#allocation22_spill]] %s1604_s24  ;;  %p54_p1 = scmp.eq.s32.totalorder %s1708_s28, 0 }
  0x12   : > { %s1974_s2 = sld [smem:[#allocation26_spill]]  ;;  %p326_p2 = scmp.lt.s32.totalorder %s1604_s24, 3 }
  0x13   : > { %s1606_s30 = smov [#allocation7]   ;;  %s1976_s4 = sld [smem:[#allocation27_spill]] }
  0x14   : > { %p1713_p3 = pnand %p1177_p0, %p326_p2  ;;  %s339_s13 = sshll.u32 %s1606_s30, 4  ;;  %s340_s13 = int_to_ptr.vmem [resolvable:$true] %s339_s13 }
  0x15   : > { %s1978_s6 = sld [smem:[#allocation28_spill]]  ;;  %s1607_s25 = smov [#allocation8]  }
  0x16   : > { %p1237_p4 = pneg %p1713_p3  ;;  %s356_s26 = sshll.u32 %s1607_s25, 4  ;;  %s357_s26 = int_to_ptr.vmem [resolvable:$true] %s356_s26 }
  0x17   : > { %s1608_s30 = smov 128   ;;  %s1609_s14 = smov 8  }
  0x18   : > { %s337_s27 = sshll.u32 %s1974_s2, 4  ;;  %p1725_p6 = pnand %p1237_p4, %p54_p1  ;;  %s338_s27 = int_to_ptr.hbm [resolvable:$true] %s337_s27 }
  0x19   : > { %s354_s16 = sshll.u32 %s1976_s4, 4  ;;  %s1979_s8 = sld [smem:[#allocation29_spill]]  ;;  %s355_s16 = int_to_ptr.hbm [resolvable:$true] %s354_s16 }
  0x1a   : > { %1240 = dma.hbm_to_vmem [thread:$0]  (!%p1725_p6), %s338_s27, 512, %s340_s13, [#allocation6], %s1608_s30, %s1608_s30, %s1609_s14  }
  0x1b   : > { %s371_s20 = sshll.u32 %s1978_s6, 4  ;;  %s1610_s19 = smov [#allocation10]   ;;  %s372_s20 = int_to_ptr.hbm [resolvable:$true] %s371_s20 }
  0x1c   : > { %1243 = dma.hbm_to_vmem [thread:$0]  (!%p1725_p6), %s355_s16, 512, %s357_s26, [#allocation9], %s1608_s30, %s1608_s30, %s1609_s14  }
  0x1d   : > { %s373_s25 = sshll.u32 %s1610_s19, 4  ;;  %s1611_s27 = smov [#allocation11]   ;;  %s374_s25 = int_to_ptr.vmem [resolvable:$true] %s373_s25 }
  0x1e   : > { %1246 = dma.hbm_to_vmem [thread:$0]  (!%p1725_p6), %s372_s20, 512, %s374_s25, [#allocation9], %s1608_s30, %s1608_s30, %s1609_s14  }
  0x1f   : > { %s388_s18 = sshll.u32 %s1979_s8, 4  ;;  %s390_s13 = sshll.u32 %s1611_s27, 4  ;;  %s389_s18 = int_to_ptr.hbm [resolvable:$true] %s388_s18  ;;  %s391_s13 = int_to_ptr.vmem [resolvable:$true] %s390_s13 }
  0x20   : > { %1249 = dma.hbm_to_vmem [thread:$0]  (!%p1725_p6), %s389_s18, 512, %s391_s13, [#allocation12], %s1608_s30, %s1608_s30, %s1609_s14  }
  0x21   : > { %s1176_s2 = sadd.s32 4294967294, %s1604_s24   ;;  %s1745_s16 = sadd.s32 1, %s1604_s24  }
  0x22   : > { %1980 = sst [smem:[#allocation23_spill]] %s1745_s16  ;;  %s37_s26 = ssub.s32 %s1604_s24, %s1745_s16 }
  0x23   : > { %s40_s15 = sadd.s32 1, %s1600_s23  ;;  %p38_p7 = scmp.eq.s32.totalorder %s37_s26, 0 }
  0x24   : > { %p47_p8 = scmp.ne.s32.totalorder %s1600_s23, %s1596_s22  ;;  %p48_p9 = scmp.eq.s32.totalorder %s1604_s24, 0 }
  0x25   : > { %p53_p10 = scmp.ne.s32.totalorder %s1596_s22, %s1592_s21  ;;  %p313_p13 = scmp.eq.s32.totalorder %s1708_s28, 1 }
  0x26   : > { %s1756_s20 = scalar_select %p38_p7, %s1600_s23, %s40_s15  }
  0x27   : > { %p1758_p11 = por %p48_p9, %p47_p8  ;;  %p1764_p12 = por %p54_p1, %p53_p10 }
  0x28   : > { %1981 = sst [smem:[#allocation24_spill]] %s1756_s20  ;;  %p319_p0 = scmp.eq.s32.totalorder %s1176_s2, 1 }
  0x29   : > { %p1265_p2 = scmp.lt.s32.totalorder %s1604_s24, 2  ;;  %s413_s30 = sand.u32 1, %s1600_s23  }
  0x2a   : > { %p1771_p4 = por %p313_p13, %p47_p8  ;;  %p1775_p6 = por %p319_p0, %p53_p10 }
  0x2b   : > { %s1779_s25 = sshll.u32 %s413_s30, 3  ;;  %s1184_s27 = sshll.u32 %s1604_s24, 3 }
  0x2c   : > { %s1985_s18 = scalar_select %p1775_p6, 1, 0 }
  0x2d   : > { %s421_s15 = scalar_lea.hbm %s1947_s0, %s1184_s27  ;;  %s417_s4 = scalar_lea.vmem [#allocation2], %s1779_s25 }
  0x2e   : > { %1986 = sst [smem:[#allocation25_spill]] %s1985_s18  ;;  %s425_s2 = sshll.u32 %s417_s4, 4  ;;  %s426_s2 = int_to_ptr.vmem [resolvable:$true] %s425_s2 }
  0x2f   : > { %s423_s6 = sshll.u32 %s421_s15, 4  ;;  %p1788_p7 = pnand %p1265_p2, %p1758_p11  ;;  %s424_s6 = int_to_ptr.hbm [resolvable:$true] %s423_s6 }
  0x30   : > { %s440_s16 = scalar_lea.hbm %s1948_s1, %s1184_s27  ;;  %s432_s18 = sand.u32 1, %s1604_s24  }
  0x31   : > { %s414_s21 = scalar_lea.sflag [#allocation3], %s413_s30  ;;  %s1462_s13 = sshra.s32 %s424_s6, 4  ;;  %s1463_s13 = int_to_ptr.hbm [resolvable:$true] %s1462_s13 }
  0x32   : > { %s1464_s26 = scalar_lea.hbm %s1463_s13, 8  ;;  %p1466_p9 = pneg %p1788_p7 }
  0x33   : > { %p1465_p8 = scmp.ne.s32.totalorder %s1463_s13, %s1464_s26  ;;  %s1469_s15 = scalar_lea.hbm %s1947_s0, 16 }
  0x34   : > { %p1470_p13 = scmp.lt.s32.totalorder %s1463_s13, %s1947_s0  ;;  %p1471_p0 = scmp.lt.s32.totalorder %s1469_s15, %s1464_s26 }
  0x35   : > { %p1467_p10 = pnand %p1466_p9, %p1465_p8 }
  0x36   : > { %p1472_p2 = por %p1471_p0, %p1470_p13 }
  0x37   : > { %p1468_p11 = pneg %p1467_p10 }
  0x39   : > { %p1473_p5 = pnand %p1472_p2, %p1468_p11 }
  0x3b   : > { %1476 = shalt.err (!%p1473_p5)
}
  0x3c   : > { %1253 = dma.hbm_to_vmem [thread:$0]  (!%p1788_p7), %s424_s6, 128, %s426_s2, %s414_s21  }
  0x3d   : > { %s442_s30 = sshll.u32 %s440_s16, 4  ;;  %s436_s27 = scalar_lea.vmem [#allocation5], %s1779_s25  ;;  %s443_s30 = int_to_ptr.hbm [resolvable:$true] %s442_s30 }
  0x3e   : > { %s444_s24 = sshll.u32 %s436_s27, 4  ;;  %s433_s4 = scalar_lea.sflag [#allocation6], %s432_s18  ;;  %s445_s24 = int_to_ptr.vmem [resolvable:$true] %s444_s24 }
  0x3f   : > { %s1492_s19 = sshra.s32 %s443_s30, 4  ;;  %s1499_s15 = scalar_lea.hbm %s1948_s1, 16  ;;  %s1493_s19 = int_to_ptr.hbm [resolvable:$true] %s1492_s19 }
  0x40   : > { %s1494_s11 = scalar_lea.hbm %s1493_s19, 8  ;;  %p1500_p5 = scmp.lt.s32.totalorder %s1493_s19, %s1948_s1 }
  0x41   : > { %p1495_p8 = scmp.ne.s32.totalorder %s1493_s19, %s1494_s11  ;;  %p1501_p13 = scmp.lt.s32.totalorder %s1499_s15, %s1494_s11 }
  0x43   : > { %p1497_p10 = pnand %p1495_p8, %p1466_p9  ;;  %p1502_p0 = por %p1501_p13, %p1500_p5 }
  0x45   : > { %p1498_p11 = pneg %p1497_p10 }
  0x47   : > { %p1503_p2 = pnand %p1502_p0, %p1498_p11 }
  0x49   : > { %1506 = shalt.err (!%p1503_p2)
}
  0x4a   : > { %1256 = dma.hbm_to_vmem [thread:$0]  (!%p1788_p7), %s443_s30, 128, %s445_s24, %s433_s4  }
  0x4b   : > { %453 = sbr.rel (%p1713_p3) target bundleno = 1275 (0x4fb), region = 68  ;;  %s1824_s21 = sand.u32 (!%p1713_p3), 1, %s1596_s22  }
  0x4c   : > { %s1827_s16 = sshll.u32 (!%p1713_p3), %s1824_s21, 3  ;;  %s456_s18 = scalar_lea.sflag (!%p1713_p3), [#allocation3], %s1824_s21 }
  0x4d   : > { %s459_s11 = scalar_lea.vmem (!%p1713_p3), [#allocation2], %s1827_s16 }
  0x50   : > { %1567 = dma.done.wait (%p1764_p12), %s456_s18, 128  }
  0x51   : > { %1569 = vsyncadd (%p1764_p12), %s456_s18, 4294967168  ;;  %s465_s8 = sand.u32 1, %s1708_s28   ;;  %s469_s29 = scalar_lea.vmem [#allocation5], %s1827_s16 }
  0x52   : > { %s466_s24 = scalar_lea.sflag [#allocation6], %s465_s8 }
  0x53   : > { %1571 = dma.done.wait (%p1764_p12), %s466_s24, 128  }
  0x54   : > { %1573 = vsyncadd (%p1764_p12), %s466_s24, 4294967168 }
  0x55   : > { %1575 = dma.done.wait (%p54_p1), [#allocation6], 512  }
  0x56   : > { %1577 = vsyncadd (%p54_p1), [#allocation6], 4294966784 }
  0x57   : > { %1579 = dma.done.wait (%p54_p1), [#allocation9], 1024  }
  0x58   : > { %1581 = vsyncadd (%p54_p1), [#allocation9], 4294966272 }
  0x59   : > { %1583 = dma.done.wait (%p54_p1), [#allocation12], 512  }
  0x5a   : > { %1585 = vsyncadd (%p54_p1), [#allocation12], 4294966784  ;;  %v575_v0 = vld [vmem:[#allocation8 + $0x18] sm:$0xff]  ;;  %v574_v2 = vld [vmem:[#allocation8 + $0x10] sm:$0xff]  ;;  %vm547_vm0 = vcmask 261120   ;;  %vm631_vm1 = vcmask 64512  }
  0x5b   : > { %v542_v1 = vld [vmem:[#allocation7 + $0x18] sm:$0xff]  ;;  %592 = vmatpush.msra.mxu1 %v575_v0  ;;  %v541_v3 = vld [vmem:[#allocation7 + $0x10] sm:$0xff]  ;;  %v573_v4 = vld [vmem:[#allocation8 + $0x8] sm:$0xff]  ;;  %s1612_s30 = smov 104   ;;  %s1613_s27 = smov 120  }
  0x5c   : > { %563 = vmatpush.msra.mxu0 %v542_v1  ;;  %v540_v5 = vld [vmem:[#allocation7 + $0x8] sm:$0xff]  ;;  %v572_v6 = vld [vmem:[#allocation8] sm:$0xff]  ;;  %v537_v9 = vld [vmem:[%s469_s29] sm:$0xff]  ;;  %s1614_s4 = smov 112   ;;  %s1615_s26 = smov 8  }
  0x5d   : > { %v1853_v7 = vld [vmem:[%s459_s11] sm:$0xff]  ;;  %593 = vmatpush.msra.mxu1 %v574_v2  ;;  %v603_v18 = vld [vmem:[#allocation10 + $0x18] sm:$0xff]  ;;  %v602_v19 = vld [vmem:[#allocation10 + $0x10] sm:$0xff]  ;;  %s1616_s15 = smov 16   ;;  %s1617_s23 = smov 24  }
  0x5e   : > { %564 = vmatpush.msra.mxu0 %v541_v3  ;;  %v539_v8 = vld [vmem:[#allocation7] sm:$0xff]  ;;  %v538_v10 = vadd.f32 %v537_v9, %v1853_v7  ;;  %623 = vmatpush.msra.mxu2 %v603_v18  ;;  %v601_v20 = vld [vmem:[#allocation10 + $0x8] sm:$0xff]  ;;  %s1212_s11 = sshll.u32 %s1708_s28, 3  ;;  %s535_s28 = scalar_lea.vmem [#allocation13], %s1827_s16 }
  0x5f   : > { %594 = vmatpush.msra.mxu1 %v573_v4  ;;  %v1316_v11 = vld [vmem:[%s1952_s5] ss:$0 sm:$0xff]  ;;  %s1040_s25 = scalar_lea.hbm %s1959_s12, %s1212_s11  ;;  %s1030_s19 = scalar_lea.sflag [#allocation4], %s1824_s21 }
  0x60   : > { %565 = vmatpush.msra.mxu0 %v540_v5  ;;  %v1317_v12 = vld [vmem:[%s1950_s3] ss:$0 sm:$0xff]  ;;  %624 = vmatpush.msra.mxu2 %v602_v19  ;;  %s1542_s16 = scalar_lea.hbm %s1959_s12, 16 }
  0x61   : > { %595 = vmatpush.msra.mxu1 %v572_v6  ;;  %v600_v21 = vld [vmem:[#allocation10] sm:$0xff] }
  0x62   : > { %566 = vmatpush.msra.mxu0 %v539_v8  ;;  %1196 = vmatmul.msk.f32.vlgmr.msra.gmra.mxu1 %vm547_vm0, %v538_v10  ;;  %v1318_v30 = vld [vmem:[%s1954_s7] ss:$0 sm:$0xff] }
  0x63   : > { %1195 = vmatmul.msk.f32.vlgmr.msra.gmra.mxu0 %vm547_vm0, %v538_v10  ;;  %625 = vmatpush.msra.mxu2 %v601_v20 }
  0x65   : > { %626 = vmatpush.msra.mxu2 %v600_v21 }
  0x66   : > { %1197 = vmatmul.msk.f32.vlgmr.msra.gmra.mxu2 %vm547_vm0, %v1853_v7 }
  0xdf   : > { %v597_v13 = vpop.f32.mrf.mxu1 }
  0xe0   : > { %v568_v14 = vpop.f32.mrf.mxu0  ;;  %v598_v15 = vadd.f32 %v1316_v11, %v597_v13 }
  0xe1   : > { %v569_v16 = vadd.f32 %v1317_v12, %v568_v14 }
  0xe2   : > { %864 = vrot.lane.b32.xlu2 %v598_v15, %s1612_s30  ;;  %707 = vrot.lane.b32.xlu1 %v598_v15, %s1613_s27 }
  0xe3   : > { %v571_v17 = vmul.f32 0.35355338, %v569_v16  ;;  %786 = vrot.lane.b32.xlu0 %v598_v15, %s1614_s4  ;;  %1198 = vmatpush.xpose.msk.msra.mxu3 %vm631_vm1, %v598_v15 }
  0xe6   : > { %1199 = vmatmul.msk.f32.vlgmr.msra.gmra.mxu3 %vm631_vm1, %v571_v17 }
  0xe9   : > { %v628_v31 = vpop.f32.mrf.mxu2 }
  0xea   : > { %862 = vrot.lane.b32.xlu2 %v571_v17, %s1612_s30  ;;  %705 = vrot.lane.b32.xlu1 %v571_v17, %s1613_s27  ;;  %v629_v32 = vadd.f32 %v1318_v30, %v628_v31 }
  0xeb   : > { %784 = vrot.lane.b32.xlu0 %v571_v17, %s1614_s4 }
  0xec   : > { %685 = vmatpush.msrb.mxu3 %v629_v32 }
 0x13c   : > { %v865_v23 = vpop.permute.xlu2 %864 }
 0x144   : > { %v863_v27 = vpop.permute.xlu2 %862 }
 0x154   : > { %v708_v22 = vpop.permute.xlu1 %707 }
 0x155   : > { %v787_v24 = vpop.permute.xlu0 %786  ;;  %1201 = vmatpush.xpose.msk.msrb.mxu0 %vm631_vm1, %v708_v22 }
 0x156   : > { %1204 = vmatpush.xpose.msk.msrb.mxu2 %vm631_vm1, %v787_v24 }
 0x159   : > { %1207 = vmatpush.xpose.msk.msra.mxu0 %vm631_vm1, %v865_v23 }
 0x15c   : > { %v706_v25 = vpop.permute.xlu1 %705 }
 0x15d   : > { %v785_v26 = vpop.permute.xlu0 %784  ;;  %1202 = vmatmul.msk.f32.vlgmr.msrb.gmra.mxu0 %vm631_vm1, %v706_v25 }
 0x15e   : > { %1205 = vmatmul.msk.f32.vlgmr.msrb.gmra.mxu2 %vm631_vm1, %v785_v26 }
 0x165   : > { %1208 = vmatmul.msk.f32.vlgmr.msra.gmra.mxu0 %vm631_vm1, %v863_v27 }
 0x169   : > { %v655_v28 = vpop.f32.mrf.mxu3 }
 0x16a   : > { %v658_v29 = vsel %vm631_vm1, %v655_v28, -inf }
 0x16b   : > { %659 = vmax.xlane.f32.xlu0 %v658_v29 }
 0x17f   : > { %743 = vrot.lane.b32.xlu0 %v629_v32, %s1613_s27  ;;  %s1042_s27 = sshll.u32 %s535_s28, 4  ;;  %s1043_s27 = int_to_ptr.vmem [resolvable:$true] %s1042_s27 }
 0x1da   : > { %v730_v33 = vpop.f32.mrf.mxu0 }
 0x1db   : > { %v733_v34 = vsel %vm631_vm1, %v730_v33, -inf }
 0x1dc   : > { %734 = vmax.xlane.f32.xlu1 %v733_v34 }
 0x1de   : > { %v660_v35 = vpop.xlane.xlu0 %659 }
 0x1df   : > { %v661_v36 = vsub.f32 %v655_v28, %v660_v35 }
 0x1e1   : > { %v662_v37 = vmul.f32 1.442695, %v661_v36  ;;  %v809_v38 = vpop.f32.mrf.mxu2 }
 0x1e2   : > { %v812_v39 = vsel %vm631_vm1, %v809_v38, -inf  ;;  %v887_v40 = vpop.f32.mrf.mxu0 }
 0x1e3   : > { %1322 = vpow2.f32 %v662_v37  ;;  %813 = vmax.xlane.f32.xlu2 %v812_v39  ;;  %v890_v42 = vsel %vm631_vm1, %v887_v40, -inf  ;;  %v960_v39 = vld [vmem:[#allocation11 + $0x18] sm:$0xff] }
 0x1e4   : > { %980 = vmatpush.msra.mxu2 %v960_v39 }
 0x1e9   : > { %v1323_v41 = vpop.eup %1322 }
 0x1ea   : > { %1200 = vmatmul.msk.f32.vlgmr.msrb.gmra.mxu3 %vm631_vm1, %v1323_v41  ;;  %v664_v57 = vsel %vm631_vm1, %v1323_v41, 0.0  ;;  %v958_v41 = vld [vmem:[#allocation11 + $0x8] sm:$0xff] }
 0x1eb   : > { %891 = vmax.xlane.f32.xlu2 %v890_v42 }
 0x1f1   : > { %v744_v43 = vpop.permute.xlu0 %743 }
 0x1f2   : > { %764 = vmatpush.msrb.mxu1 %v744_v43  ;;  %v957_v43 = vld [vmem:[#allocation11] sm:$0xff] }
 0x1f5   : > { %821 = vrot.lane.b32.xlu1 %v629_v32, %s1614_s4  ;;  %s1044_s4 = sshll.u32 %s1040_s25, 4  ;;  %s1045_s4 = int_to_ptr.hbm [resolvable:$true] %s1044_s4 }
 0x1f6   : > { %s1536_s13 = sshra.s32 %s1045_s4, 4  ;;  %s1537_s13 = int_to_ptr.hbm [resolvable:$true] %s1536_s13 }
 0x1f7   : > { %p1543_p7 = scmp.lt.s32.totalorder %s1537_s13, %s1959_s12 }
 0x203   : > { %899 = vrot.lane.b32.xlu2 %v629_v32, %s1612_s30  ;;  %s1988_s30 = sld [smem:[#allocation30_spill]] }
 0x24f   : > { %v735_v44 = vpop.xlane.xlu1 %734 }
 0x250   : > { %v736_v45 = vsub.f32 %v730_v33, %v735_v44 }
 0x252   : > { %v737_v46 = vmul.f32 1.442695, %v736_v45 }
 0x254   : > { %1324 = vpow2.f32 %v737_v46 }
 0x256   : > { %v814_v47 = vpop.xlane.xlu2 %813 }
 0x257   : > { %v815_v48 = vsub.f32 %v809_v38, %v814_v47 }
 0x259   : > { %v816_v49 = vmul.f32 1.442695, %v815_v48 }
 0x25a   : > { %v1325_v50 = vpop.eup %1324 }
 0x25b   : > { %1326 = vpow2.f32 %v816_v49  ;;  %1203 = vmatmul.msk.f32.vlgmr.msrb.gmra.mxu1 %vm631_vm1, %v1325_v50  ;;  %v739_v51 = vsel %vm631_vm1, %v1325_v50, 0.0 }
 0x25c   : > { %740 = vadd.xlane.f32.xlu0 %v739_v51 }
 0x25e   : > { %v892_v52 = vpop.xlane.xlu2 %891 }
 0x25f   : > { %v893_v53 = vsub.f32 %v887_v40, %v892_v52  ;;  %v959_v40 = vld [vmem:[#allocation11 + $0x10] sm:$0xff] }
 0x260   : > { %981 = vmatpush.msra.mxu2 %v959_v40 }
 0x261   : > { %v1327_v54 = vpop.eup %1326  ;;  %v894_v55 = vmul.f32 1.442695, %v893_v53 }
 0x262   : > { %v818_v56 = vsel %vm631_vm1, %v1327_v54, 0.0  ;;  %982 = vmatpush.msra.mxu2 %v958_v41 }
 0x263   : > { %1328 = vpow2.f32 %v894_v55  ;;  %819 = vadd.xlane.f32.xlu1 %v818_v56 }
 0x264   : > { %665 = vadd.xlane.f32.xlu0 %v664_v57  ;;  %983 = vmatpush.msra.mxu2 %v957_v43 }
 0x266   : > { %v900_v58 = vpop.permute.xlu2 %899 }
 0x267   : > { %920 = vmatpush.msra.mxu1 %v900_v58  ;;  %v822_v59 = vpop.permute.xlu1 %821 }
 0x268   : > { %842 = vmatpush.msra.mxu3 %v822_v59 }
 0x269   : > { %v1329_v60 = vpop.eup %1328  ;;  %1206 = vmatmul.msk.f32.vlgmr.msra.gmra.mxu3 %vm631_vm1, %v1327_v54 }
 0x26a   : > { %1209 = vmatmul.msk.f32.vlgmr.msra.gmra.mxu1 %vm631_vm1, %v1329_v60  ;;  %v896_v61 = vsel %vm631_vm1, %v1329_v60, 0.0 }
 0x26b   : > { %897 = vadd.xlane.f32.xlu2 %v896_v61  ;;  %v1319_v61 = vld [vmem:[%s1956_s9] ss:$0 sm:$0xff] }
 0x26d   : > { %v687_v18 = vpop.f32.mrf.mxu3 }
 0x2cf   : > { %v741_v62 = vpop.xlane.xlu0 %740 }
 0x2d0   : > { %1330 = vrcp.f32 %v741_v62  ;;  %v780_v3 = vand.u32 2147483648, %v741_v62  ;;  %v778_v5 = vand.u32 2147483647, %v741_v62  ;;  %vm774_vm3 = vweird.f32 %v741_v62 }
 0x2d2   : > { %v781_v10 = vor.u32 1.1754944e-38, %v780_v3  ;;  %vm779_vm5 = vcmp.eq.f32.partialorder %v778_v5, 8.507059e+37 }
 0x2d6   : > { %v1331_v63 = vpop.eup %1330  ;;  %v820_v0 = vpop.xlane.xlu1 %819 }
 0x2d7   : > { %v770_v1 = vmul.f32 %v1331_v63, %v741_v62  ;;  %1332 = vrcp.f32 %v820_v0  ;;  %vm775_vm2 = vweird.f32 %v1331_v63  ;;  %v858_v22 = vand.u32 2147483648, %v820_v0  ;;  %v666_v42 = vpop.xlane.xlu0 %665 }
 0x2d8   : > { %vm776_vm4 = vmor %vm774_vm3, %vm775_vm2  ;;  %v766_v14 = vpop.f32.mrf.mxu1  ;;  %vm852_vm7 = vweird.f32 %v820_v0  ;;  %v856_v23 = vand.u32 2147483647, %v820_v0  ;;  %v701_v49 = vand.u32 2147483648, %v666_v42  ;;  %vm695_vm15 = vweird.f32 %v666_v42 }
 0x2d9   : > { %v771_v2 = vsub.f32 1.0, %v770_v1  ;;  %v859_v29 = vor.u32 1.1754944e-38, %v858_v22  ;;  %v699_v50 = vand.u32 2147483647, %v666_v42 }
 0x2da   : > { %vm857_vm10 = vcmp.eq.f32.partialorder %v856_v23, 8.507059e+37  ;;  %v702_v52 = vor.u32 1.1754944e-38, %v701_v49  ;;  %v1320_v23 = vld [vmem:[%s1957_s10] ss:$0 sm:$0xff] }
 0x2db   : > { %v772_v4 = vmul.f32 %v1331_v63, %v771_v2  ;;  %vm700_vm3 = vcmp.eq.f32.partialorder %v699_v50, 8.507059e+37  ;;  %v1618_v2 = vmov 32.0  }
 0x2dd   : > { %v1333_v6 = vpop.eup %1332  ;;  %v773_v8 = vadd.f32 %v1331_v63, %v772_v4 }
 0x2de   : > { %v848_v9 = vmul.f32 %v1333_v6, %v820_v0  ;;  %v898_v11 = vpop.xlane.xlu2 %897  ;;  %vm853_vm6 = vweird.f32 %v1333_v6 }
 0x2df   : > { %v777_v12 = vsel %vm776_vm4, %v1331_v63, %v773_v8  ;;  %1334 = vrcp.f32 %v898_v11  ;;  %vm854_vm8 = vmor %vm852_vm7, %vm853_vm6  ;;  %v936_v25 = vand.u32 2147483648, %v898_v11  ;;  %v934_v28 = vand.u32 2147483647, %v898_v11 }
 0x2e0   : > { %v849_v13 = vsub.f32 1.0, %v848_v9  ;;  %v782_v15 = vsel %vm779_vm5, %v781_v10, %v777_v12  ;;  %vm930_vm11 = vweird.f32 %v898_v11  ;;  %1336 = vrcp.f32 %v666_v42 }
 0x2e1   : > { %v783_v16 = vmul.f32 %v782_v15, %v766_v14  ;;  %v937_v33 = vor.u32 1.1754944e-38, %v936_v25  ;;  %vm935_vm13 = vcmp.eq.f32.partialorder %v934_v28, 8.507059e+37  ;;  %vm953_vm4 = vcmask 130048  }
 0x2e2   : > { %v850_v17 = vmul.f32 %v1333_v6, %v849_v13  ;;  %vm955_vm5 = vcmask 195584   ;;  %1338 = vrcp.f32 %v1618_v2 }
 0x2e3   : > { %941 = vrot.lane.b32.xlu1 %v783_v16, %s1615_s26  ;;  %s1538_s26 = scalar_lea.hbm %s1537_s13, 8 }
 0x2e4   : > { %v851_v20 = vadd.f32 %v1333_v6, %v850_v17  ;;  %p1539_p1 = scmp.ne.s32.totalorder %s1537_s13, %s1538_s26  ;;  %p1544_p9 = scmp.lt.s32.totalorder %s1542_s16, %s1538_s26 }
 0x2e5   : > { %v1335_v19 = vpop.eup %1334 }
 0x2e6   : > { %v926_v21 = vmul.f32 %v1335_v19, %v898_v11  ;;  %v855_v26 = vsel %vm854_vm8, %v1333_v6, %v851_v20  ;;  %vm931_vm9 = vweird.f32 %v1335_v19  ;;  %v1337_v44 = vpop.eup %1336  ;;  %p1540_p3 = pnand %p1539_p1, %p1771_p4  ;;  %p1545_p8 = por %p1544_p9, %p1543_p7 }
 0x2e7   : > { %v860_v32 = vsel %vm857_vm10, %v859_v29, %v855_v26  ;;  %vm932_vm12 = vmor %vm930_vm11, %vm931_vm9  ;;  %v922_v36 = vpop.f32.mrf.mxu1  ;;  %v691_v45 = vmul.f32 %v1337_v44, %v666_v42  ;;  %vm696_vm14 = vweird.f32 %v1337_v44  ;;  %v1321_v26 = vld [vmem:[%s1988_s30] ss:$0 sm:$0xff] }
 0x2e8   : > { %v927_v24 = vsub.f32 1.0, %v926_v21  ;;  %vm697_vm2 = vmor %vm695_vm15, %vm696_vm14  ;;  %v1339_v3 = vpop.eup %1338  ;;  %p1541_p12 = pneg %p1540_p3 }
 0x2e9   : > { %v692_v46 = vsub.f32 1.0, %v691_v45  ;;  %v995_v4 = vmul.f32 32.0, %v1339_v3 }
 0x2ea   : > { %v928_v27 = vmul.f32 %v1335_v19, %v927_v24  ;;  %p1546_p10 = pnand %p1545_p8, %p1541_p12 }
 0x2eb   : > { %v693_v47 = vmul.f32 %v1337_v44, %v692_v46  ;;  %v996_v5 = vsub.f32 1.0, %v995_v4 }
 0x2ec   : > { %v929_v30 = vadd.f32 %v1335_v19, %v928_v27  ;;  %v844_v31 = vpop.f32.mrf.mxu3 }
 0x2ed   : > { %v861_v34 = vmul.f32 %v860_v32, %v844_v31  ;;  %v694_v48 = vadd.f32 %v1337_v44, %v693_v47  ;;  %v997_v6 = vmul.f32 %v1339_v3, %v996_v5 }
 0x2ee   : > { %v933_v35 = vsel %vm932_vm12, %v1335_v19, %v929_v30 }
 0x2ef   : > { %v938_v37 = vsel %vm935_vm13, %v937_v33, %v933_v35  ;;  %945 = vrot.lane.b32.xlu0 %v861_v34, %s1616_s15  ;;  %v698_v51 = vsel %vm697_vm2, %v1337_v44, %v694_v48  ;;  %v998_v8 = vadd.f32 %v1339_v3, %v997_v6 }
 0x2f0   : > { %v939_v38 = vmul.f32 %v938_v37, %v922_v36  ;;  %v703_v53 = vsel %vm700_vm3, %v702_v52, %v698_v51 }
 0x2f1   : > { %v704_v55 = vmul.f32 %v703_v53, %v687_v18 }
 0x2f2   : > { %949 = vrot.lane.b32.xlu2 %v939_v38, %s1617_s23 }
 0x34c   : > { %v950_v58 = vpop.permute.xlu2 %949 }
 0x355   : > { %v942_v54 = vpop.permute.xlu1 %941 }
 0x356   : > { %v952_v56 = vsel %vm631_vm1, %v704_v55, %v942_v54  ;;  %vm999_vm1 = vweird.f32 %v1339_v3 }
 0x357   : > { %v1000_v9 = vsel %vm999_vm1, %v1339_v3, %v998_v8 }
 0x361   : > { %v946_v57 = vpop.permute.xlu0 %945 }
 0x362   : > { %v954_v59 = vsel %vm953_vm4, %v952_v56, %v946_v57 }
 0x363   : > { %v956_v60 = vsel %vm955_vm5, %v954_v59, %v950_v58 }
 0x364   : > { %1210 = vmatmul.msk.f32.vlgmr.msra.gmra.mxu2 %vm547_vm0, %v956_v60 }
 0x3e7   : > { %v985_v62 = vpop.f32.mrf.mxu2 }
 0x3e8   : > { %v986_v63 = vadd.f32 %v1319_v61, %v985_v62 }
 0x3ea   : > { %v988_v0 = vadd.f32 %v986_v63, %v1853_v7 }
 0x3ec   : > { %v991_v1 = vsel %vm547_vm0, %v988_v0, 0.0 }
 0x3ed   : > { %992 = vadd.xlane.f32.xlu0 %v991_v1 }
 0x460   : > { %v993_v10 = vpop.xlane.xlu0 %992 }
 0x461   : > { %v1001_v11 = vmul.f32 %v1000_v9, %v993_v10 }
 0x463   : > { %v1002_v12 = vsub.f32 %v988_v0, %v1001_v11 }
 0x465   : > { %v1003_v13 = vmul.f32 %v1002_v12, %v1002_v12 }
 0x467   : > { %v1004_v14 = vsel %vm547_vm0, %v1003_v13, 0.0 }
 0x468   : > { %1005 = vadd.xlane.f32.xlu1 %v1004_v14 }
 0x4db   : > { %v1006_v7 = vpop.xlane.xlu1 %1005 }
 0x4dc   : > { %v1007_v15 = vmul.f32 %v1006_v7, %v1000_v9 }
 0x4de   : > { %v1008_v16 = vadd.f32 1e-05, %v1007_v15 }
 0x4e0   : > { %1340 = vrsqrt.f32 %v1008_v16  ;;  %vm1015_vm7 = vweird.f32 %v1008_v16 }
 0x4e6   : > { %v1341_v17 = vpop.eup %1340 }
 0x4e7   : > { %v1010_v18 = vmul.f32 %v1341_v17, %v1008_v16  ;;  %vm1016_vm6 = vweird.f32 %v1341_v17 }
 0x4e8   : > { %vm1017_vm8 = vmor %vm1015_vm7, %vm1016_vm6 }
 0x4e9   : > { %v1011_v19 = vmul.f32 %v1341_v17, %v1010_v18 }
 0x4eb   : > { %v1012_v20 = vmul.f32 0.5, %v1011_v19 }
 0x4ed   : > { %v1013_v21 = vsub.f32 1.5, %v1012_v20 }
 0x4ef   : > { %v1014_v22 = vmul.f32 %v1341_v17, %v1013_v21 }
 0x4f1   : > { %v1018_v24 = vsel %vm1017_vm8, %v1341_v17, %v1014_v22 }
 0x4f2   : > { %v1019_v25 = vmul.f32 %v1018_v24, %v1002_v12 }
 0x4f4   : > { %v1023_v27 = vmul.f32 %v1320_v23, %v1019_v25 }
 0x4f6   : > { %v1027_v28 = vadd.f32 %v1321_v26, %v1023_v27 }
 0x4f8   : > { %1028 = vst.msk [vmem:[%s535_s28] sm:$0xff] %vm547_vm0, %v1027_v28 }
 0x4f9   : > { %1549 = shalt.err (!%p1546_p10)
}
 0x4fa   : > { %1235 = dma.vmem_to_hbm [thread:$0]  (%p1771_p4), %s1043_s27, 128, %s1045_s4, %s1030_s19  }
 0x4fb PF: > { %s1989_s21 = sld [smem:[#allocation20_spill]] }
 0x4fc   : > { %s1991_s8 = sld [smem:[#allocation22_spill]] }
 0x501   : > { %s1056_s24 = sand.u32 1, %s1989_s21  }
 0x502   : > { %p1992_p11 = scmp.ge.s32.totalorder %s1991_s8, 2  ;;  %s1057_s29 = scalar_lea.sflag [#allocation4], %s1056_s24 }
 0x504   : > { %p1258_p5 = pnand %p1992_p11, %p1775_p6 }
 0x506   : > { %p1259_p13 = pneg %p1258_p5 }
 0x508   : > { %1587 = dma.done.wait (%p1259_p13), %s1057_s29, 128  }
 0x509   : > { %1589 = vsyncadd (%p1259_p13), %s1057_s29, 4294967168  ;;  %s1993_s24 = sld [smem:[#allocation23_spill]]  ;;  %s1996_s21 = smov %s1596_s22 }
 0x50a   : > { %s1994_s17 = sld [smem:[#allocation21_spill]] }
 0x50b   : > { %s1995_s23 = sld [smem:[#allocation24_spill]] }
 0x50f   : > { %p30_p0 = scmp.ge.s32.totalorder %s1993_s24, 4  }
 0x510   : > { %s1997_s22 = smov %s1994_s17 }
 0x511   :  { %32 = sbr.rel (!%p30_p0) target bundleno = 15 (0xf), region = 142 }
 0x516   :  { %1063 = vsyncpa [#allocation3], 1 }
 0x517   :  { %1065 = vsyncpa [#allocation3 + $0x1], 1 }
 0x518   :  { %1066 = vsyncpa [#allocation6], 1 }
 0x519   :  { %1068 = vsyncpa [#allocation6 + $0x1], 1 }
 0x51a   :  { %1069 = vsyncpa [#allocation9], 1 }
 0x51b   :  { %1070 = vsyncpa [#allocation12], 1 }
 0x51c   :  { %1071 = vsyncpa [#allocation4], 1 }
 0x51d   :  { %1073 = vsyncpa [#allocation4 + $0x1], 1 }

</bundles_post_ra>
